<compile_context>
chip_gen: v5e
topology: v5e:2x2
jax: 0.10.0
libtpu: 0.0.40
codegen_flags: <defaults>
</compile_context>

<pallas_src>
import functools

import jax
import jax.numpy as jnp
from jax.experimental import pallas as pl
from jax.experimental.pallas import tpu as pltpu

# Architectural / padded constants.
F_IN, H1, H2, H3, OUT = 561, 128, 64, 32, 6
F_PAD = 640     # 561 -> next multiple of 128 (lane-aligned K on the dominant matmul)
OUT_PAD = 128   # 6   -> 128 (lane-dense output store)


def _round_up(n, m):
    return (n + m - 1) // m * m


def fnn_kernel(x_ref,
               w1_ref, b1_ref,
               w2_ref, b2_ref,
               w3_ref, b3_ref,
               w4_ref, b4_ref,
               out_ref):
    # x tile and weights are bf16; accumulate on the MXU in f32,
    # keep bias-add / ReLU in f32 on the VPU.
    x = x_ref[...]

    # fc1 + ReLU (dropout1 = identity at inference)
    h = jnp.dot(x, w1_ref[...], preferred_element_type=jnp.float32) + b1_ref[...]
    h = jnp.maximum(h, 0.0)

    # fc2 + ReLU (dropout2 = identity at inference)
    h = jnp.dot(h.astype(jnp.bfloat16), w2_ref[...],
                preferred_element_type=jnp.float32) + b2_ref[...]
    h = jnp.maximum(h, 0.0)

    # fc3 + ReLU (dropout3 = identity at inference)
    h = jnp.dot(h.astype(jnp.bfloat16), w3_ref[...],
                preferred_element_type=jnp.float32) + b3_ref[...]
    h = jnp.maximum(h, 0.0)

    # fc4 (raw logits; columns >= 6 are zero-padded weights)
    y = jnp.dot(h.astype(jnp.bfloat16), w4_ref[...],
                preferred_element_type=jnp.float32) + b4_ref[...]

    out_ref[...] = y  # (TB, OUT_PAD) f32, lane-dense unmasked store


@functools.partial(jax.jit, static_argnames=("tb",))
def fnn_forward(x, padded_params, *, tb=256):
    """x: [B, 561] float32. padded_params: output of pad_params()."""
    B = x.shape[0]
    # Batch tile: >= MXU height when the batch allows it, multiple of 8 always.
    TB = min(tb, _round_up(B, 8))
    B_pad = _round_up(B, TB)

    # Pad batch + feature dims, cast activations to bf16 (halves x DMA bytes).
    x_p = jnp.pad(x, ((0, B_pad - B), (0, F_PAD - x.shape[1]))).astype(jnp.bfloat16)

    pp = padded_params
    const = lambda i: (0, 0)  # weights/biases: same block every step -> VMEM-resident

    in_specs = [
        pl.BlockSpec((TB, F_PAD), lambda i: (i, 0)),       # x tile, pipelined
        pl.BlockSpec((F_PAD, H1), const), pl.BlockSpec((1, H1), const),
        pl.BlockSpec((H1, H2), const),    pl.BlockSpec((1, H2), const),
        pl.BlockSpec((H2, H3), const),    pl.BlockSpec((1, H3), const),
        pl.BlockSpec((H3, OUT_PAD), const), pl.BlockSpec((1, OUT_PAD), const),
    ]
    out_spec = pl.BlockSpec((TB, OUT_PAD), lambda i: (i, 0))

    flops = 2 * B_pad * (F_PAD * H1 + H1 * H2 + H2 * H3 + H3 * OUT_PAD)
    bytes_accessed = (
        x_p.size * x_p.dtype.itemsize
        + sum(int(v.size) * v.dtype.itemsize for v in pp.values())
        + B_pad * OUT_PAD * 4
    )

    out = pl.pallas_call(
        fnn_kernel,
        out_shape=jax.ShapeDtypeStruct((B_pad, OUT_PAD), jnp.float32),
        grid_spec=pltpu.PrefetchScalarGridSpec(
            num_scalar_prefetch=0,
            grid=(B_pad // TB,),
            in_specs=in_specs,
            out_specs=out_spec,
        ),
        compiler_params=pltpu.CompilerParams(
            # Batch tiles are independent: v7x shards them over its 2 TCs.
            dimension_semantics=("parallel",),
        ),
        cost_estimate=pl.CostEstimate(
            flops=flops, transcendentals=0, bytes_accessed=bytes_accessed),
    )(
        x_p,
        pp["w1"], pp["b1"],
        pp["w2"], pp["b2"],
        pp["w3"], pp["b3"],
        pp["w4"], pp["b4"],
    )

    return out[:B, :OUT]


def init_params(key, input_dim=F_IN, hidden1=H1, hidden2=H2, hidden3=H3,
                output_dim=OUT):
    """Deterministic synthetic parameters, weights stored transposed [in, out]
    (vs. PyTorch nn.Linear's [out, in]) so the kernel computes y = x @ W + b."""
    dims = [(input_dim, hidden1), (hidden1, hidden2),
            (hidden2, hidden3), (hidden3, output_dim)]
    params = {}
    for i, (din, dout) in enumerate(dims, start=1):
        key, kw, kb = jax.random.split(key, 3)
        scale = 1.0 / jnp.sqrt(jnp.float32(din))  # matches nn.Linear init range
        params[f"w{i}"] = jax.random.uniform(
            kw, (din, dout), jnp.float32, minval=-scale, maxval=scale)
        params[f"b{i}"] = jax.random.uniform(
            kb, (1, dout), jnp.float32, minval=-scale, maxval=scale)
    return params


def pad_params(params):
    """Zero-pad w1 rows (561->640) and w4/b4 columns (6->128); cast weights to
    bf16 for the MXU, keep biases f32 (added post-accumulation)."""
    return {
        "w1": jnp.pad(params["w1"], ((0, F_PAD - F_IN), (0, 0))).astype(jnp.bfloat16),
        "b1": params["b1"].astype(jnp.float32),
        "w2": params["w2"].astype(jnp.bfloat16),
        "b2": params["b2"].astype(jnp.float32),
        "w3": params["w3"].astype(jnp.bfloat16),
        "b3": params["b3"].astype(jnp.float32),
        "w4": jnp.pad(params["w4"], ((0, 0), (0, OUT_PAD - OUT))).astype(jnp.bfloat16),
        "b4": jnp.pad(params["b4"], ((0, 0), (0, OUT_PAD - OUT))).astype(jnp.float32),
    }


def fnn_reference(x, pp):
    """Plain-JAX reference mirroring the kernel numerics (bf16-rounded operands,
    f32 accumulation) for correctness checking."""
    def layer(a, wk, bk):
        a16 = a.astype(jnp.bfloat16).astype(jnp.float32)
        return a16 @ pp[wk].astype(jnp.float32) + pp[bk]

    h = jnp.pad(x, ((0, 0), (0, F_PAD - x.shape[1])))
    h = jnp.maximum(layer(h, "w1", "b1"), 0.0)
    h = jnp.maximum(layer(h, "w2", "b2"), 0.0)
    h = jnp.maximum(layer(h, "w3", "b3"), 0.0)
    y = layer(h, "w4", "b4")
    return y[:, :OUT]


if __name__ == "__main__":
    key = jax.random.PRNGKey(0)
    kx, kp = jax.random.split(key)

    B = 8
    x = jax.random.normal(kx, (B, F_IN), jnp.float32)
    params = init_params(kp)
    pp = pad_params(params)

    out = fnn_forward(x, pp)
    out = jax.block_until_ready(out)

    ref = fnn_reference(x, pp)
    assert out.shape == (B, OUT), out.shape
    assert jnp.allclose(out, ref, atol=2e-3, rtol=2e-3), "mismatch vs reference"

    print("KERNEL_OK")
</pallas_src>

<mosaic_0001>
module attributes {stable_mosaic.version = 11 : i64} {
  func.func @fnn_kernel(%arg0: i32, %arg1: memref<8x640xbf16, #tpu.memory_space<vmem>>, %arg2: memref<640x128xbf16, #tpu.memory_space<vmem>>, %arg3: memref<1x128xf32, #tpu.memory_space<vmem>>, %arg4: memref<128x64xbf16, #tpu.memory_space<vmem>>, %arg5: memref<1x64xf32, #tpu.memory_space<vmem>>, %arg6: memref<64x32xbf16, #tpu.memory_space<vmem>>, %arg7: memref<1x32xf32, #tpu.memory_space<vmem>>, %arg8: memref<32x128xbf16, #tpu.memory_space<vmem>>, %arg9: memref<1x128xf32, #tpu.memory_space<vmem>>, %arg10: memref<8x128xf32, #tpu.memory_space<vmem>>) attributes {dimension_semantics = [#tpu.dimension_semantics<parallel>], iteration_bounds = array<i64: 1>, scalar_prefetch = 0 : i64, scratch_operands = 0 : i64, tpu.core_type = #tpu.core_type<tc>, window_params = [{transform_indices = @transform_0, window_bounds = array<i64: 8, 640>}, {pipeline_mode = #tpu.pipeline_mode<synchronous>, transform_indices = @transform_1, window_bounds = array<i64: 640, 128>}, {pipeline_mode = #tpu.pipeline_mode<synchronous>, transform_indices = @transform_2, window_bounds = array<i64: 1, 128>}, {pipeline_mode = #tpu.pipeline_mode<synchronous>, transform_indices = @transform_3, window_bounds = array<i64: 128, 64>}, {pipeline_mode = #tpu.pipeline_mode<synchronous>, transform_indices = @transform_4, window_bounds = array<i64: 1, 64>}, {pipeline_mode = #tpu.pipeline_mode<synchronous>, transform_indices = @transform_5, window_bounds = array<i64: 64, 32>}, {pipeline_mode = #tpu.pipeline_mode<synchronous>, transform_indices = @transform_6, window_bounds = array<i64: 1, 32>}, {pipeline_mode = #tpu.pipeline_mode<synchronous>, transform_indices = @transform_7, window_bounds = array<i64: 32, 128>}, {pipeline_mode = #tpu.pipeline_mode<synchronous>, transform_indices = @transform_8, window_bounds = array<i64: 1, 128>}, {transform_indices = @transform_9, window_bounds = array<i64: 8, 128>}]} {
    %c0 = arith.constant 0 : index
    %c0_0 = arith.constant 0 : index
    %0 = vector.load %arg1[%c0, %c0_0] : memref<8x640xbf16, #tpu.memory_space<vmem>>, vector<8x640xbf16>
    %c0_1 = arith.constant 0 : index
    %c0_2 = arith.constant 0 : index
    %1 = vector.load %arg2[%c0_1, %c0_2] : memref<640x128xbf16, #tpu.memory_space<vmem>>, vector<640x128xbf16>
    %cst = arith.constant dense<0.000000e+00> : vector<8x128xf32>
    %2 = tpu.matmul %0, %1, %cst {dimension_numbers = #tpu.dot_dimension_numbers<[1], [0], [0], [1], [0, 0, 1, 1], [], []>} : vector<8x640xbf16>, vector<640x128xbf16>, vector<8x128xf32> -> vector<8x128xf32>
    %c0_3 = arith.constant 0 : index
    %c0_4 = arith.constant 0 : index
    %3 = vector.load %arg3[%c0_3, %c0_4] : memref<1x128xf32, #tpu.memory_space<vmem>>, vector<1x128xf32>
    %4 = vector.broadcast %3 : vector<1x128xf32> to vector<8x128xf32>
    %5 = arith.addf %2, %4 : vector<8x128xf32>
    %cst_5 = arith.constant 0.000000e+00 : f32
    %6 = vector.broadcast %cst_5 : f32 to vector<8x128xf32>
    %7 = arith.maximumf %5, %6 : vector<8x128xf32>
    %8 = arith.truncf %7 : vector<8x128xf32> to vector<8x128xbf16>
    %c0_6 = arith.constant 0 : index
    %c0_7 = arith.constant 0 : index
    %9 = vector.load %arg4[%c0_6, %c0_7] : memref<128x64xbf16, #tpu.memory_space<vmem>>, vector<128x64xbf16>
    %cst_8 = arith.constant dense<0.000000e+00> : vector<8x64xf32>
    %10 = tpu.matmul %8, %9, %cst_8 {dimension_numbers = #tpu.dot_dimension_numbers<[1], [0], [0], [1], [0, 0, 1, 1], [], []>} : vector<8x128xbf16>, vector<128x64xbf16>, vector<8x64xf32> -> vector<8x64xf32>
    %c0_9 = arith.constant 0 : index
    %c0_10 = arith.constant 0 : index
    %11 = vector.load %arg5[%c0_9, %c0_10] : memref<1x64xf32, #tpu.memory_space<vmem>>, vector<1x64xf32>
    %12 = vector.broadcast %11 : vector<1x64xf32> to vector<8x64xf32>
    %13 = arith.addf %10, %12 : vector<8x64xf32>
    %cst_11 = arith.constant 0.000000e+00 : f32
    %14 = vector.broadcast %cst_11 : f32 to vector<8x64xf32>
    %15 = arith.maximumf %13, %14 : vector<8x64xf32>
    %16 = arith.truncf %15 : vector<8x64xf32> to vector<8x64xbf16>
    %c0_12 = arith.constant 0 : index
    %c0_13 = arith.constant 0 : index
    %17 = vector.load %arg6[%c0_12, %c0_13] : memref<64x32xbf16, #tpu.memory_space<vmem>>, vector<64x32xbf16>
    %cst_14 = arith.constant dense<0.000000e+00> : vector<8x32xf32>
    %18 = tpu.matmul %16, %17, %cst_14 {dimension_numbers = #tpu.dot_dimension_numbers<[1], [0], [0], [1], [0, 0, 1, 1], [], []>} : vector<8x64xbf16>, vector<64x32xbf16>, vector<8x32xf32> -> vector<8x32xf32>
    %c0_15 = arith.constant 0 : index
    %c0_16 = arith.constant 0 : index
    %19 = vector.load %arg7[%c0_15, %c0_16] : memref<1x32xf32, #tpu.memory_space<vmem>>, vector<1x32xf32>
    %20 = vector.broadcast %19 : vector<1x32xf32> to vector<8x32xf32>
    %21 = arith.addf %18, %20 : vector<8x32xf32>
    %cst_17 = arith.constant 0.000000e+00 : f32
    %22 = vector.broadcast %cst_17 : f32 to vector<8x32xf32>
    %23 = arith.maximumf %21, %22 : vector<8x32xf32>
    %24 = arith.truncf %23 : vector<8x32xf32> to vector<8x32xbf16>
    %c0_18 = arith.constant 0 : index
    %c0_19 = arith.constant 0 : index
    %25 = vector.load %arg8[%c0_18, %c0_19] : memref<32x128xbf16, #tpu.memory_space<vmem>>, vector<32x128xbf16>
    %cst_20 = arith.constant dense<0.000000e+00> : vector<8x128xf32>
    %26 = tpu.matmul %24, %25, %cst_20 {dimension_numbers = #tpu.dot_dimension_numbers<[1], [0], [0], [1], [0, 0, 1, 1], [], []>} : vector<8x32xbf16>, vector<32x128xbf16>, vector<8x128xf32> -> vector<8x128xf32>
    %c0_21 = arith.constant 0 : index
    %c0_22 = arith.constant 0 : index
    %27 = vector.load %arg9[%c0_21, %c0_22] : memref<1x128xf32, #tpu.memory_space<vmem>>, vector<1x128xf32>
    %28 = vector.broadcast %27 : vector<1x128xf32> to vector<8x128xf32>
    %29 = arith.addf %26, %28 : vector<8x128xf32>
    %c0_23 = arith.constant 0 : index
    %c0_24 = arith.constant 0 : index
    %30 = vector.load %arg10[%c0_23, %c0_24] : memref<8x128xf32, #tpu.memory_space<vmem>>, vector<8x128xf32>
    tpu.vector_store %arg10[%c0_23, %c0_24], %29 {strides = array<i32>} : memref<8x128xf32, #tpu.memory_space<vmem>>, vector<8x128xf32>,
    return
  }
  func.func @transform_0(%arg0: i32) -> (i32, i32) {
    %c0_i32 = arith.constant 0 : i32
    %c0_i32_0 = arith.constant 0 : i32
    return %arg0, %c0_i32 : i32, i32
  }
  func.func @transform_1(%arg0: i32) -> (i32, i32) {
    %c0_i32 = arith.constant 0 : i32
    %c0_i32_0 = arith.constant 0 : i32
    %c0_i32_1 = arith.constant 0 : i32
    return %c0_i32, %c0_i32_0 : i32, i32
  }
  func.func @transform_2(%arg0: i32) -> (i32, i32) {
    %c0_i32 = arith.constant 0 : i32
    %c0_i32_0 = arith.constant 0 : i32
    %c0_i32_1 = arith.constant 0 : i32
    return %c0_i32, %c0_i32_0 : i32, i32
  }
  func.func @transform_3(%arg0: i32) -> (i32, i32) {
    %c0_i32 = arith.constant 0 : i32
    %c0_i32_0 = arith.constant 0 : i32
    %c0_i32_1 = arith.constant 0 : i32
    return %c0_i32, %c0_i32_0 : i32, i32
  }
  func.func @transform_4(%arg0: i32) -> (i32, i32) {
    %c0_i32 = arith.constant 0 : i32
    %c0_i32_0 = arith.constant 0 : i32
    %c0_i32_1 = arith.constant 0 : i32
    return %c0_i32, %c0_i32_0 : i32, i32
  }
  func.func @transform_5(%arg0: i32) -> (i32, i32) {
    %c0_i32 = arith.constant 0 : i32
    %c0_i32_0 = arith.constant 0 : i32
    %c0_i32_1 = arith.constant 0 : i32
    return %c0_i32, %c0_i32_0 : i32, i32
  }
  func.func @transform_6(%arg0: i32) -> (i32, i32) {
    %c0_i32 = arith.constant 0 : i32
    %c0_i32_0 = arith.constant 0 : i32
    %c0_i32_1 = arith.constant 0 : i32
    return %c0_i32, %c0_i32_0 : i32, i32
  }
  func.func @transform_7(%arg0: i32) -> (i32, i32) {
    %c0_i32 = arith.constant 0 : i32
    %c0_i32_0 = arith.constant 0 : i32
    %c0_i32_1 = arith.constant 0 : i32
    return %c0_i32, %c0_i32_0 : i32, i32
  }
  func.func @transform_8(%arg0: i32) -> (i32, i32) {
    %c0_i32 = arith.constant 0 : i32
    %c0_i32_0 = arith.constant 0 : i32
    %c0_i32_1 = arith.constant 0 : i32
    return %c0_i32, %c0_i32_0 : i32, i32
  }
  func.func @transform_9(%arg0: i32) -> (i32, i32) {
    %c0_i32 = arith.constant 0 : i32
    %c0_i32_0 = arith.constant 0 : i32
    return %arg0, %c0_i32 : i32, i32
  }
}

</mosaic_0001>

<bundles_post_ra>
// kernel: fnn_forward.1
= control target key start
LH: loop header
LB: loop body
LE: loop exit
PB: predicated region body
PF: predicated region fallthrough
CT: control target
= control target key end

     0   :  { %14 = vsyncpa [#allocation3], 0  ;;  %s1110_s0 = inlined_call_operand.vmem [shape: bf16[8,640], index: 0, kind: input, shape index: {}]   ;;  %s1111_s1 = inlined_call_operand.hbm [shape: bf16[640,128], index: 1, kind: input, shape index: {}]   ;;  %s1112_s2 = inlined_call_operand.vmem [shape: f32[1,128], index: 2, kind: input, shape index: {}]   ;;  %s1113_s3 = inlined_call_operand.vmem [shape: bf16[128,64], index: 3, kind: input, shape index: {}]   ;;  %s1114_s4 = inlined_call_operand.vmem [shape: f32[1,64], index: 4, kind: input, shape index: {}]   ;;  %s1115_s5 = inlined_call_operand.vmem [shape: bf16[64,32], index: 5, kind: input, shape index: {}]   ;;  %s1116_s6 = inlined_call_operand.vmem [shape: f32[1,32], index: 6, kind: input, shape index: {}]   ;;  %s1117_s7 = inlined_call_operand.vmem [shape: bf16[32,128], index: 7, kind: input, shape index: {}]   ;;  %s1118_s8 = inlined_call_operand.vmem [shape: f32[1,128], index: 8, kind: input, shape index: {}]   ;;  %s1119_s9 = inlined_call_operand.hbm [shape: f32[8,128], index: 9, kind: output, shape index: {}]  }
   0x1   :  { %15 = vsyncpa [#allocation4], 0  ;;  %s22_s11 = sshll.u32 %s1111_s1, 4  ;;  %s987_s12 = smov [#allocation2]   ;;  %s23_s11 = int_to_ptr.hbm [resolvable:$true] %s22_s11 }
   0x2   :  { %s24_s13 = sshll.u32 %s987_s12, 4  ;;  %s988_s14 = smov 64   ;;  %s25_s13 = int_to_ptr.vmem [resolvable:$true] %s24_s13 }
   0x3   :  { %s989_s15 = smov 4  }
   0x4   :  { %30 = dma.hbm_to_vmem [thread:$0]  %s23_s11, 5120, %s25_s13, [#allocation3], %s988_s14, %s988_s14, %s989_s15  }
   0x5   :  { %983 = dma.done.wait [#allocation3], 5120  }
   0x6   :  { %984 = vsyncadd [#allocation3], 4294962176  ;;  %v880_v0 = vld [vmem:[#allocation2 + $0x38] sm:$0xff]  ;;  %v879_v3 = vld [vmem:[#allocation2 + $0x30] sm:$0xff]  ;;  %vm581_vm0 = vcmask 523264   ;;  %vm620_vm1 = vcmask 261120  }
   0x7   :  { %v896_v1 = vld [vmem:[#allocation2 + $0xb8] sm:$0xff]  ;;  %395 = vmatpush.bf16.msra.mxu0 %v880_v0  ;;  %v895_v5 = vld [vmem:[#allocation2 + $0xb0] sm:$0xff]  ;;  %v878_v8 = vld [vmem:[#allocation2 + $0x28] sm:$0xff]  ;;  %s990_s28 = smov [#allocation5]   ;;  %s645_s11 = sshll.u32 %s1119_s9, 4  ;;  %s646_s11 = int_to_ptr.hbm [resolvable:$true] %s645_s11 }
   0x8   :  { %v904_v2 = vld [vmem:[#allocation2 + $0xf8] sm:$0xff]  ;;  %421 = vmatpush.bf16.msra.mxu2 %v896_v1  ;;  %v903_v6 = vld [vmem:[#allocation2 + $0xf0] sm:$0xff]  ;;  %v894_v9 = vld [vmem:[#allocation2 + $0xa8] sm:$0xff]  ;;  %s643_s29 = sshll.u32 %s990_s28, 4  ;;  %s644_s29 = int_to_ptr.vmem [resolvable:$true] %s643_s29 }
   0x9   :  { %v888_v4 = vld [vmem:[#allocation2 + $0x78] sm:$0xff]  ;;  %434 = vmatpush.bf16.msra.mxu3 %v904_v2  ;;  %v887_v7 = vld [vmem:[#allocation2 + $0x70] sm:$0xff]  ;;  %v902_v10 = vld [vmem:[#allocation2 + $0xe8] sm:$0xff] }
   0xa   :  { %408 = vmatpush.bf16.msra.mxu1 %v888_v4  ;;  %v886_v11 = vld [vmem:[#allocation2 + $0x68] sm:$0xff]  ;;  %v877_v12 = vld [vmem:[#allocation2 + $0x20] sm:$0xff]  ;;  %v876_v16 = vld [vmem:[#allocation2 + $0x18] sm:$0xff] }
   0xb   :  { %396 = vmatpush.bf16.msra.mxu0 %v879_v3  ;;  %v893_v13 = vld [vmem:[#allocation2 + $0xa0] sm:$0xff]  ;;  %v892_v17 = vld [vmem:[#allocation2 + $0x98] sm:$0xff]  ;;  %v875_v20 = vld [vmem:[#allocation2 + $0x10] sm:$0xff] }
   0xc   :  { %422 = vmatpush.bf16.msra.mxu2 %v895_v5  ;;  %v901_v14 = vld [vmem:[#allocation2 + $0xe0] sm:$0xff]  ;;  %v900_v18 = vld [vmem:[#allocation2 + $0xd8] sm:$0xff]  ;;  %v891_v21 = vld [vmem:[#allocation2 + $0x90] sm:$0xff] }
   0xd   :  { %435 = vmatpush.bf16.msra.mxu3 %v903_v6  ;;  %v885_v15 = vld [vmem:[#allocation2 + $0x60] sm:$0xff]  ;;  %v884_v19 = vld [vmem:[#allocation2 + $0x58] sm:$0xff]  ;;  %v899_v22 = vld [vmem:[#allocation2 + $0xd0] sm:$0xff] }
   0xe   :  { %409 = vmatpush.bf16.msra.mxu1 %v887_v7  ;;  %v883_v23 = vld [vmem:[#allocation2 + $0x50] sm:$0xff]  ;;  %v874_v24 = vld [vmem:[#allocation2 + $0x8] sm:$0xff]  ;;  %v50_v25 = vld [vmem:[%s1110_s0] sm:$0xff] }
   0xf   :  { %397 = vmatpush.bf16.msra.mxu0 %v878_v8  ;;  %v890_v26 = vld [vmem:[#allocation2 + $0x88] sm:$0xff]  ;;  %v140_v30 = vunpack.c.l.b16 %v50_v25  ;;  %v873_v31 = vld [vmem:[#allocation2] sm:$0xff]  ;;  %v912_v33 = vld [vmem:[#allocation2 + $0x138] sm:$0xff]  ;;  %v141_v38 = vunpack.c.h.b16 %v50_v25 }
  0x10   :  { %423 = vmatpush.bf16.msra.mxu2 %v894_v9  ;;  %v898_v27 = vld [vmem:[#allocation2 + $0xc8] sm:$0xff]  ;;  %v889_v34 = vld [vmem:[#allocation2 + $0x80] sm:$0xff]  ;;  %v911_v41 = vld [vmem:[#allocation2 + $0x130] sm:$0xff] }
  0x11   :  { %436 = vmatpush.bf16.msra.mxu3 %v902_v10  ;;  %v51_v28 = vld [vmem:[%s1110_s0 + $0x8] sm:$0xff]  ;;  %v897_v36 = vld [vmem:[#allocation2 + $0xc0] sm:$0xff]  ;;  %v145_v39 = vpack.c.b16 %v140_v30, %v140_v30  ;;  %v146_v43 = vpack.c.b16 %v141_v38, %v141_v38  ;;  %v908_v46 = vld [vmem:[#allocation2 + $0x118] sm:$0xff] }
  0x12   :  { %410 = vmatpush.bf16.msra.mxu1 %v886_v11  ;;  %v882_v29 = vld [vmem:[#allocation2 + $0x48] sm:$0xff]  ;;  %v142_v32 = vunpack.c.l.b16 %v51_v28  ;;  %v143_v35 = vunpack.c.h.b16 %v51_v28  ;;  %v881_v37 = vld [vmem:[#allocation2 + $0x40] sm:$0xff]  ;;  %v907_v47 = vld [vmem:[#allocation2 + $0x110] sm:$0xff] }
  0x13   :  { %398 = vmatpush.bf16.msra.mxu0 %v877_v12  ;;  %v910_v44 = vld [vmem:[#allocation2 + $0x128] sm:$0xff]  ;;  %v909_v45 = vld [vmem:[#allocation2 + $0x120] sm:$0xff]  ;;  %v52_v49 = vld [vmem:[%s1110_s0 + $0x10] sm:$0xf] }
  0x14   :  { %424 = vmatpush.bf16.msra.mxu2 %v893_v13  ;;  %v147_v40 = vpack.c.b16 %v142_v32, %v142_v32  ;;  %v148_v42 = vpack.c.b16 %v143_v35, %v143_v35  ;;  %v906_v48 = vld [vmem:[#allocation2 + $0x108] sm:$0xff]  ;;  %v144_v50 = vunpack.c.l.b16 %v52_v49  ;;  %v905_v51 = vld [vmem:[#allocation2 + $0x100] sm:$0xff]  ;;  %v920_v53 = vld [vmem:[%s1113_s3 + $0x38] sm:$0xff] }
  0x15   :  { %437 = vmatpush.bf16.msra.mxu3 %v901_v14  ;;  %v919_v54 = vld [vmem:[%s1113_s3 + $0x30] sm:$0xff]  ;;  %v918_v55 = vld [vmem:[%s1113_s3 + $0x28] sm:$0xff]  ;;  %v917_v56 = vld [vmem:[%s1113_s3 + $0x20] sm:$0xff] }
  0x16   :  { %411 = vmatpush.bf16.msra.mxu1 %v885_v15  ;;  %v149_v52 = vpack.c.b16 %v144_v50, %v144_v50  ;;  %v916_v57 = vld [vmem:[%s1113_s3 + $0x18] sm:$0xff]  ;;  %v915_v58 = vld [vmem:[%s1113_s3 + $0x10] sm:$0xff]  ;;  %v914_v59 = vld [vmem:[%s1113_s3 + $0x8] sm:$0xff] }
  0x17   :  { %399 = vmatpush.bf16.msra.mxu0 %v876_v16  ;;  %v913_v60 = vld [vmem:[%s1113_s3] sm:$0xff]  ;;  %v924_v63 = vld [vmem:[%s1115_s5 + $0x18] sm:$0xff]  ;;  %v923_v1 = vld [vmem:[%s1115_s5 + $0x10] sm:$0xff] }
  0x18   :  { %425 = vmatpush.bf16.msra.mxu2 %v892_v17  ;;  %v922_v5 = vld [vmem:[%s1115_s5 + $0x8] sm:$0xff]  ;;  %v931_v6 = vld [vmem:[%s1112_s2] ss:$0 sm:$0xff] }
  0x19   :  { %438 = vmatpush.bf16.msra.mxu3 %v900_v18  ;;  %v921_v18 = vld [vmem:[%s1115_s5] sm:$0xff] }
  0x1a   :  { %412 = vmatpush.bf16.msra.mxu1 %v884_v19  ;;  %v926_v19 = vld [vmem:[%s1117_s7 + $0x8] sm:$0xff] }
  0x1b   :  { %400 = vmatpush.bf16.msra.mxu0 %v875_v20  ;;  %v925_v20 = vld [vmem:[%s1117_s7] sm:$0xff] }
  0x1c   :  { %426 = vmatpush.bf16.msra.mxu2 %v891_v21  ;;  %v932_v21 = vld [vmem:[%s1114_s4] ss:$0 sm:$0xff] }
  0x1d   :  { %439 = vmatpush.bf16.msra.mxu3 %v899_v22 }
  0x1e   :  { %413 = vmatpush.bf16.msra.mxu1 %v883_v23 }
  0x1f   :  { %401 = vmatpush.bf16.msra.mxu0 %v874_v24 }
  0x20   :  { %427 = vmatpush.bf16.msra.mxu2 %v890_v26 }
  0x21   :  { %440 = vmatpush.bf16.msra.mxu3 %v898_v27  ;;  %v933_v27 = vld [vmem:[%s1116_s6] ss:$0 sm:$0xff] }
  0x22   :  { %414 = vmatpush.bf16.msra.mxu1 %v882_v29 }
  0x23   :  { %402 = vmatpush.bf16.msra.mxu0 %v873_v31 }
  0x24   :  { %428 = vmatpush.bf16.msra.mxu2 %v889_v34 }
  0x25   :  { %441 = vmatpush.bf16.msra.mxu3 %v897_v36 }
  0x26   :  { %415 = vmatpush.bf16.msra.mxu1 %v881_v37  ;;  %403 = vmatmul.bf16.vlgmr.msra.gmra.mxu0 %v145_v39 }
  0x27   :  { %447 = vmatpush.bf16.msrb.mxu0 %v912_v33  ;;  %429 = vmatmul.bf16.vlgmr.msra.gmra.mxu2 %v147_v40  ;;  %v934_v33 = vld [vmem:[%s1118_s8] ss:$0 sm:$0xff] }
  0x28   :  { %442 = vmatmul.bf16.vlgmr.msra.gmra.mxu3 %v148_v42  ;;  %589 = vmatpush.bf16.msrb.mxu2 %v924_v63 }
  0x29   :  { %416 = vmatmul.bf16.vlgmr.msra.gmra.mxu1 %v146_v43  ;;  %630 = vmatpush.bf16.msrb.mxu3 %v926_v19 }
  0x2a   :  { %530 = vmatpush.bf16.msrb.mxu1 %v920_v53 }
  0x2b   :  { %448 = vmatpush.bf16.msrb.mxu0 %v911_v41 }
  0x2c   :  { %590 = vmatpush.bf16.msrb.mxu2 %v923_v1 }
  0x2d   :  { %631 = vmatpush.bf16.msrb.mxu3 %v925_v20 }
  0x2e   :  { %531 = vmatpush.bf16.msrb.mxu1 %v919_v54 }
  0x2f   :  { %449 = vmatpush.bf16.msrb.mxu0 %v910_v44 }
  0x30   :  { %591 = vmatpush.bf16.msrb.mxu2 %v922_v5 }
  0x32   :  { %532 = vmatpush.bf16.msrb.mxu1 %v918_v55 }
  0x33   :  { %450 = vmatpush.bf16.msrb.mxu0 %v909_v45 }
  0x34   :  { %592 = vmatpush.bf16.msrb.mxu2 %v921_v18 }
  0x36   :  { %533 = vmatpush.bf16.msrb.mxu1 %v917_v56 }
  0x37   :  { %451 = vmatpush.bf16.msrb.mxu0 %v908_v46 }
  0x3a   :  { %534 = vmatpush.bf16.msrb.mxu1 %v916_v57 }
  0x3b   :  { %452 = vmatpush.bf16.msrb.mxu0 %v907_v47 }
  0x3e   :  { %535 = vmatpush.bf16.msrb.mxu1 %v915_v58 }
  0x3f   :  { %453 = vmatpush.bf16.msrb.mxu0 %v906_v48 }
  0x42   :  { %536 = vmatpush.bf16.msrb.mxu1 %v914_v59 }
  0x43   :  { %454 = vmatpush.bf16.msrb.mxu0 %v905_v51 }
  0x46   :  { %455 = vmatmul.bf16.vlgmr.msrb.gmra.mxu0 %v149_v52  ;;  %537 = vmatpush.bf16.msrb.mxu1 %v913_v60 }
  0xa3   :  { %v404_v61 = vpop.f32.mrf.mxu0 }
  0xa4   :  { %v405_v8 = vadd.f32 %v931_v6, %v404_v61 }
  0xa6   :  { %v417_v62 = vpop.f32.mrf.mxu1 }
  0xa7   :  { %v418_v10 = vadd.f32 %v417_v62, %v405_v8 }
  0xaa   :  { %v430_v0 = vpop.f32.mrf.mxu2 }
  0xab   :  { %v406_v2 = vpop.f32.mrf.mxu0  ;;  %v443_v3 = vpop.f32.mrf.mxu3  ;;  %v431_v11 = vadd.f32 %v430_v0, %v418_v10 }
  0xad   :  { %v444_v12 = vadd.f32 %v443_v3, %v431_v11 }
  0xae   :  { %v419_v4 = vpop.f32.mrf.mxu1 }
  0xb2   :  { %v432_v7 = vpop.f32.mrf.mxu2 }
  0xb3   :  { %v445_v9 = vpop.f32.mrf.mxu3 }
  0xc3   :  { %v456_v13 = vpop.f32.mrf.mxu0 }
  0xc4   :  { %v457_v14 = vadd.f32 %v456_v13, %v444_v12 }
  0xc6   :  { %v460_v15 = vmax.f32 %v457_v14, 0.0 }
  0xc8   :  { %v461_v16 = vpack.c.bf16 %v460_v15, %v460_v15 }
  0xca   :  { %538 = vmatmul.bf16.vlgmr.msrb.gmra.mxu1 %v461_v16 }
  0xcb   :  { %v458_v17 = vpop.f32.mrf.mxu0 }
 0x147   :  { %v539_v22 = vpop.f32.mrf.mxu1 }
 0x148   :  { %v540_v23 = vadd.f32 %v932_v21, %v539_v22 }
 0x14a   :  { %v543_v24 = vmax.f32 %v540_v23, 0.0 }
 0x14c   :  { %v544_v25 = vpack.c.bf16 %v543_v24, %v543_v24 }
 0x14e   :  { %863 = vmatmul.msk.bf16.vlgmr.msrb.gmra.mxu2 %vm581_vm0, %v544_v25 }
 0x14f   :  { %v541_v26 = vpop.f32.mrf.mxu1 }
 0x1d1   :  { %v594_v28 = vpop.f32.mrf.mxu2 }
 0x1d2   :  { %v595_v29 = vadd.f32 %v933_v27, %v594_v28 }
 0x1d4   :  { %v598_v30 = vmax.f32 %v595_v29, 0.0 }
 0x1d6   :  { %v599_v31 = vpack.c.bf16 %v598_v30, %v598_v30 }
 0x1d8   :  { %872 = vmatmul.msk.bf16.vlgmr.msrb.gmra.mxu3 %vm620_vm1, %v599_v31 }
 0x1d9   :  { %v596_v32 = vpop.f32.mrf.mxu2 }
 0x25b   :  { %v633_v34 = vpop.f32.mrf.mxu3 }
 0x25c   :  { %v634_v35 = vadd.f32 %v934_v33, %v633_v34 }
 0x25e   :  { %637 = vst [vmem:[#allocation5] sm:$0xff] %v634_v35 }
 0x25f   :  { %648 = dma.vmem_to_hbm [thread:$0]  %s644_s29, 128, %s646_s11, [#allocation4]  }
 0x263   :  { %v635_v36 = vpop.f32.mrf.mxu3 }
 0x264   :  { %985 = dma.done.wait [#allocation4], 128  }
 0x265   :  { %986 = vsyncadd [#allocation4], 4294967168 }
 0x266   :  { %653 = vsyncpa [#allocation3], 1 }
 0x267   :  { %654 = vsyncpa [#allocation4], 1 }

</bundles_post_ra>
